<compile_context>
chip_gen: v7x
topology: tpu7x:2x2x1
jax: 0.10.0
libtpu: 0.0.40
codegen_flags: <defaults>
</compile_context>

<pallas_src>
import functools

import jax
import jax.numpy as jnp
from jax import lax
from jax.experimental import pallas as pl
from jax.experimental.pallas import tpu as pltpu


def _decoder_kernel(h0_ref, c0_ref, w_hh_ref, corr_ref, w_hh_aug_ref,
                    bias_aug_ref, w_lin_t_ref, b_lin_ref,
                    out_ref, g_ref, c_ref,
                    *, hidden_size, t_chunk, num_chunks, last_steps, unroll):
    H = hidden_size
    NG = 4 * H
    TC = t_chunk
    B = h0_ref.shape[0]
    chunk = pl.program_id(0)

    # One-time init (chunk 0): fold the SOS step (y = 0, flag = 0) into the
    # carried pre-activation: g_0 = h0 @ W_hh + (bias0 - bias_aug), so that
    # g_0 + bias_aug == h0 @ W_hh + b_ih + b_hh (the true t == 0 gates).
    @pl.when(chunk == 0)
    def _():
        g_ref[...] = jnp.dot(h0_ref[...], w_hh_ref[...],
                             preferred_element_type=jnp.float32) + corr_ref[...]
        c_ref[...] = c0_ref[...]

    # Loop-invariant hoists (JAX does not CSE broadcasts).
    w_hh_aug = w_hh_aug_ref[...]                                   # (H, 4H)
    bias_aug_b = jnp.broadcast_to(bias_aug_ref[...], (B, NG))      # (B, 4H)
    w_lin_b = jnp.broadcast_to(w_lin_t_ref[...], (B, H))           # (B, H)
    b_lin_b = jnp.broadcast_to(b_lin_ref[...], (B, 1))             # (B, 1)
    lane_id = lax.broadcasted_iota(jnp.int32, (B, TC), 1)          # lane-dense select

    # TODO(synk): weight-stationary MXU (pltpu.matmul_push_rhs / matmul_acc_lhs /
    #             matmul_pop) would stage W_hh_aug once per kernel and shave the
    #             per-step MXU feed; left out pending semantics validation.
    # TODO(synk): casting (h_new, W_hh_aug) to bf16 for the dot (f32 accumulate,
    #             f32 elementwise) halves MXU feed bandwidth on v5e/v6e/v7x but
    #             rounds the recurrence; enable only with a loosened tolerance.

    def step(t, carry):
        g, c, acc = carry
        gates = g + bias_aug_b                                     # (B, 4H)
        if H % 128 == 0:
            # Gate blocks are already vreg-aligned: slice then activate each.
            i_g = jax.nn.sigmoid(gates[:, 0 * H:1 * H])
            f_g = jax.nn.sigmoid(gates[:, 1 * H:2 * H])
            g_g = jnp.tanh(gates[:, 2 * H:3 * H])
            o_g = jax.nn.sigmoid(gates[:, 3 * H:4 * H])
        else:
            # Full-vreg activations: 2 EUP passes over (B, 4H) instead of four
            # sub-128-lane passes, then cheap lane slices of the results.
            sg = jax.nn.sigmoid(gates)
            tg = jnp.tanh(gates)
            i_g = sg[:, 0 * H:1 * H]
            f_g = sg[:, 1 * H:2 * H]
            g_g = tg[:, 2 * H:3 * H]
            o_g = sg[:, 3 * H:4 * H]
        c_new = f_g * c + i_g * g_g
        h_new = o_g * jnp.tanh(c_new)
        # Output head (off the recurrence critical path): VPU mul + lane reduce,
        # so the per-step MXU matmul stays at exactly 4H output columns.
        y = jnp.sum(h_new * w_lin_b, axis=-1, keepdims=True) + b_lin_b   # (B, 1)
        acc = jnp.where(lane_id == t, y, acc)                      # one-vreg select
        # Single MXU matmul per step: next-step pre-activation (W_lin is folded
        # into W_hh_aug, so y never re-enters the recurrence).
        g_new = jnp.dot(h_new, w_hh_aug, preferred_element_type=jnp.float32)
        return g_new, c_new, acc

    def run_chunk(n_steps):
        carry0 = (g_ref[...], c_ref[...], jnp.zeros((B, TC), jnp.float32))
        g_fin, c_fin, acc = lax.fori_loop(0, n_steps, step, carry0,
                                          unroll=max(1, min(unroll, n_steps)))
        g_ref[...] = g_fin
        c_ref[...] = c_fin
        out_ref[...] = acc      # one unmasked, lane-dense (B, TC) store per chunk

    if num_chunks == 1:
        run_chunk(last_steps)
    elif last_steps == TC:
        run_chunk(TC)
    else:
        @pl.when(chunk < num_chunks - 1)
        def _():
            run_chunk(TC)

        @pl.when(chunk == num_chunks - 1)
        def _():
            run_chunk(last_steps)


def decoder_forward(h0, c0, output_seq_len, params, *, t_chunk=128, unroll=8):
    """h0, c0: (B, H).  Returns (B, T, O) like Decoder.forward(target_output=None)."""
    w_ih, w_hh, b_ih, b_hh, w_lin, b_lin = params
    B, H = h0.shape
    O = w_lin.shape[1]
    # The SOS input zeros(B, 1) in the PyTorch module implies output_size == 1;
    # the lane-dense (B,1)->(B,TC) select in the kernel also relies on it.
    assert O == 1, "Decoder's SOS input zeros(B, 1) implies output_size == 1"
    T = int(output_seq_len)
    assert T >= 1
    NG = 4 * H
    TC = int(t_chunk)
    num_chunks = -(-T // TC)
    T_pad = num_chunks * TC
    last_steps = T - (num_chunks - 1) * TC

    f32 = jnp.float32
    row_y = w_ih[0:1, :].astype(f32)                 # W_ih row for the y feature
    row_flag = w_ih[1:2, :].astype(f32)              # W_ih row for the flag feature
    bias0 = (b_ih + b_hh).astype(f32)                # (1, 4H)
    # Fold the y-feedback (linear head) and the flag into the recurrent weight/bias.
    w_hh_aug = w_hh.astype(f32) + w_lin.astype(f32) @ row_y        # (H, 4H)
    bias_aug = bias0 + b_lin.astype(f32) @ row_y + row_flag        # (1, 4H)
    corr = bias0 - bias_aug                                        # init-only correction
    w_lin_t = w_lin.astype(f32).T                                  # (1, H)

    # TODO(synk): unroll is a shape-dependent knob — drop towards 1-2 once B or H
    #             grow (live ranges scale with unroll); 8 is good at tiny shapes.
    const = lambda i: (0, 0)
    grid_spec = pltpu.PrefetchScalarGridSpec(
        num_scalar_prefetch=0,
        grid=(num_chunks,),                  # sequential T-chunks (recurrent state)
        in_specs=[
            pl.BlockSpec((B, H), const),     # h0
            pl.BlockSpec((B, H), const),     # c0
            pl.BlockSpec((H, NG), const),    # W_hh (plain; init only)
            pl.BlockSpec((1, NG), const),    # bias0 - bias_aug (init only)
            pl.BlockSpec((H, NG), const),    # W_hh_aug = W_hh + W_lin @ W_ih[0:1]
            pl.BlockSpec((1, NG), const),    # bias_aug
            pl.BlockSpec((1, H), const),     # W_lin^T
            pl.BlockSpec((1, O), const),     # b_lin
        ],
        out_specs=pl.BlockSpec((B, TC), lambda i: (0, i)),
        scratch_shapes=[
            pltpu.VMEM((B, NG), jnp.float32),   # carried g_t = h_t @ W_hh_aug
            pltpu.VMEM((B, H), jnp.float32),    # carried c_t
        ],
    )

    kernel = functools.partial(
        _decoder_kernel, hidden_size=H, t_chunk=TC, num_chunks=num_chunks,
        last_steps=last_steps, unroll=unroll)

    # TODO(synk): on v7x add a leading "parallel" grid axis over B-tiles to use
    #             both TensorCores, and set vmem_limit_bytes explicitly when
    #             scaling B/T (64 MiB physical VMEM there vs 128 MiB on v5e/v6e).
    out_bt = pl.pallas_call(
        kernel,
        out_shape=jax.ShapeDtypeStruct((B, T_pad), jnp.float32),
        grid_spec=grid_spec,
        compiler_params=pltpu.CompilerParams(
            dimension_semantics=("arbitrary",)),   # recurrence: chunks are serial
    )(h0.astype(f32), c0.astype(f32), w_hh.astype(f32), corr, w_hh_aug,
      bias_aug, w_lin_t, b_lin.astype(f32))

    # (B, T_pad) -> (B, T, O); matches decoder_outputs.permute(1, 0, 2).
    return out_bt[:, :T, None]


def decoder_reference(h0, c0, output_seq_len, params):
    """Plain-JAX reference mirroring the PyTorch forward (target_output=None)."""
    w_ih, w_hh, b_ih, b_hh, w_lin, b_lin = params
    B, H = h0.shape
    O = w_lin.shape[1]
    h, c = h0, c0
    y = jnp.zeros((B, O), jnp.float32)
    outs = []
    for t in range(output_seq_len):
        flag = 0.0 if t == 0 else 1.0
        x = jnp.concatenate([y, jnp.full((B, 1), flag, jnp.float32)], axis=1)
        gates = x @ w_ih + h @ w_hh + b_ih + b_hh
        i_g = jax.nn.sigmoid(gates[:, 0 * H:1 * H])
        f_g = jax.nn.sigmoid(gates[:, 1 * H:2 * H])
        g_g = jnp.tanh(gates[:, 2 * H:3 * H])
        o_g = jax.nn.sigmoid(gates[:, 3 * H:4 * H])
        c = f_g * c + i_g * g_g
        h = o_g * jnp.tanh(c)
        y = h @ w_lin + b_lin
        outs.append(y)
    return jnp.transpose(jnp.stack(outs, axis=0), (1, 0, 2))


def init_params(key, hidden_size, output_size, extra_input_dim=True):
    """Deterministic init matching nn.LSTM / nn.Linear parameter shapes
    (stored transposed: (in_features, out_features))."""
    H, O = hidden_size, output_size
    I = O + 1 if extra_input_dim else O
    k = jax.random.split(key, 6)
    s = 1.0 / jnp.sqrt(H)
    w_ih = jax.random.uniform(k[0], (I, 4 * H), jnp.float32, -s, s)
    w_hh = jax.random.uniform(k[1], (H, 4 * H), jnp.float32, -s, s)
    b_ih = jax.random.uniform(k[2], (1, 4 * H), jnp.float32, -s, s)
    b_hh = jax.random.uniform(k[3], (1, 4 * H), jnp.float32, -s, s)
    w_lin = jax.random.uniform(k[4], (H, O), jnp.float32, -s, s)
    b_lin = jax.random.uniform(k[5], (1, O), jnp.float32, -s, s)
    return (w_ih, w_hh, b_ih, b_hh, w_lin, b_lin)


if __name__ == "__main__":
    # Small shapes implied by the module: output_size must be 1 (SOS is zeros(B, 1)).
    hidden_size = 32
    output_size = 1
    batch = 8
    output_seq_len = 8

    key = jax.random.PRNGKey(0)
    kp, kh, kc = jax.random.split(key, 3)
    params = init_params(kp, hidden_size, output_size, extra_input_dim=True)

    # PyTorch passes hidden_0 / cell_0 as (num_layers=1, batch, hidden); squeeze layer dim.
    hidden_0 = jax.random.normal(kh, (1, batch, hidden_size), jnp.float32)
    cell_0 = jax.random.normal(kc, (1, batch, hidden_size), jnp.float32)

    # --- single-chunk path (T = 8) ---
    out = decoder_forward(hidden_0[0], cell_0[0], output_seq_len, params)
    out = jax.block_until_ready(out)
    ref = decoder_reference(hidden_0[0], cell_0[0], output_seq_len, params)
    assert out.shape == (batch, output_seq_len, output_size), out.shape
    assert jnp.allclose(out, ref, atol=5e-5, rtol=1e-5), (
        float(jnp.max(jnp.abs(out - ref))))

    # --- multi-chunk path with a ragged tail (T = 150 -> chunks of 128 + 22) ---
    T2 = 150
    out2 = decoder_forward(hidden_0[0], cell_0[0], T2, params)
    out2 = jax.block_until_ready(out2)
    ref2 = decoder_reference(hidden_0[0], cell_0[0], T2, params)
    assert out2.shape == (batch, T2, output_size), out2.shape
    assert jnp.allclose(out2, ref2, atol=1e-4, rtol=1e-5), (
        float(jnp.max(jnp.abs(out2 - ref2))))

    print("KERNEL_OK")
</pallas_src>

<mosaic_0001>
module attributes {stable_mosaic.version = 11 : i64} {
  func.func @_decoder_kernel(%arg0: i32, %arg1: memref<8x32xf32, #tpu.memory_space<vmem>>, %arg2: memref<8x32xf32, #tpu.memory_space<vmem>>, %arg3: memref<32x128xf32, #tpu.memory_space<vmem>>, %arg4: memref<1x128xf32, #tpu.memory_space<vmem>>, %arg5: memref<32x128xf32, #tpu.memory_space<vmem>>, %arg6: memref<1x128xf32, #tpu.memory_space<vmem>>, %arg7: memref<1x32xf32, #tpu.memory_space<vmem>>, %arg8: memref<1x1xf32, #tpu.memory_space<vmem>>, %arg9: memref<8x128xf32, #tpu.memory_space<vmem>>, %arg10: memref<8x128xf32, #tpu.memory_space<vmem>>, %arg11: memref<8x32xf32, #tpu.memory_space<vmem>>) attributes {dimension_semantics = [#tpu.dimension_semantics<arbitrary>], iteration_bounds = array<i64: 1>, scalar_prefetch = 0 : i64, scratch_operands = 2 : i64, tpu.core_type = #tpu.core_type<tc>, window_params = [{pipeline_mode = #tpu.pipeline_mode<synchronous>, transform_indices = @transform_0, window_bounds = array<i64: 8, 32>}, {pipeline_mode = #tpu.pipeline_mode<synchronous>, transform_indices = @transform_1, window_bounds = array<i64: 8, 32>}, {pipeline_mode = #tpu.pipeline_mode<synchronous>, transform_indices = @transform_2, window_bounds = array<i64: 32, 128>}, {pipeline_mode = #tpu.pipeline_mode<synchronous>, transform_indices = @transform_3, window_bounds = array<i64: 1, 128>}, {pipeline_mode = #tpu.pipeline_mode<synchronous>, transform_indices = @transform_4, window_bounds = array<i64: 32, 128>}, {pipeline_mode = #tpu.pipeline_mode<synchronous>, transform_indices = @transform_5, window_bounds = array<i64: 1, 128>}, {pipeline_mode = #tpu.pipeline_mode<synchronous>, transform_indices = @transform_6, window_bounds = array<i64: 1, 32>}, {pipeline_mode = #tpu.pipeline_mode<synchronous>, transform_indices = @transform_7, window_bounds = array<i64: 1, 1>}, {transform_indices = @transform_8, window_bounds = array<i64: 8, 128>}]} {
    %c0_i32 = arith.constant 0 : i32
    %0 = arith.cmpi eq, %arg0, %c0_i32 : i32
    %1 = arith.extui %0 : i1 to i32
    %c0_i32_0 = arith.constant 0 : i32
    %2 = arith.cmpi ne, %1, %c0_i32_0 : i32
    scf.if %2 {
      %c0_43 = arith.constant 0 : index
      %c0_44 = arith.constant 0 : index
      %228 = vector.load %arg1[%c0_43, %c0_44] : memref<8x32xf32, #tpu.memory_space<vmem>>, vector<8x32xf32>
      %c0_45 = arith.constant 0 : index
      %c0_46 = arith.constant 0 : index
      %229 = vector.load %arg3[%c0_45, %c0_46] : memref<32x128xf32, #tpu.memory_space<vmem>>, vector<32x128xf32>
      %cst_47 = arith.constant dense<0.000000e+00> : vector<8x128xf32>
      %230 = tpu.matmul %228, %229, %cst_47 {dimension_numbers = #tpu.dot_dimension_numbers<[1], [0], [0], [1], [0, 0, 1, 1], [], []>} : vector<8x32xf32>, vector<32x128xf32>, vector<8x128xf32> -> vector<8x128xf32>
      %c0_48 = arith.constant 0 : index
      %c0_49 = arith.constant 0 : index
      %231 = vector.load %arg4[%c0_48, %c0_49] : memref<1x128xf32, #tpu.memory_space<vmem>>, vector<1x128xf32>
      %232 = vector.broadcast %231 : vector<1x128xf32> to vector<8x128xf32>
      %233 = arith.addf %230, %232 : vector<8x128xf32>
      %c0_50 = arith.constant 0 : index
      %c0_51 = arith.constant 0 : index
      %234 = vector.load %arg10[%c0_50, %c0_51] : memref<8x128xf32, #tpu.memory_space<vmem>>, vector<8x128xf32>
      tpu.vector_store %arg10[%c0_50, %c0_51], %233 {strides = array<i32>} : memref<8x128xf32, #tpu.memory_space<vmem>>, vector<8x128xf32>,
      %c0_52 = arith.constant 0 : index
      %c0_53 = arith.constant 0 : index
      %235 = vector.load %arg2[%c0_52, %c0_53] : memref<8x32xf32, #tpu.memory_space<vmem>>, vector<8x32xf32>
      %c0_54 = arith.constant 0 : index
      %c0_55 = arith.constant 0 : index
      %236 = vector.load %arg11[%c0_54, %c0_55] : memref<8x32xf32, #tpu.memory_space<vmem>>, vector<8x32xf32>
      tpu.vector_store %arg11[%c0_54, %c0_55], %235 {strides = array<i32>} : memref<8x32xf32, #tpu.memory_space<vmem>>, vector<8x32xf32>,
    } else {
    }
    %c0 = arith.constant 0 : index
    %c0_1 = arith.constant 0 : index
    %3 = vector.load %arg5[%c0, %c0_1] : memref<32x128xf32, #tpu.memory_space<vmem>>, vector<32x128xf32>
    %c0_2 = arith.constant 0 : index
    %c0_3 = arith.constant 0 : index
    %4 = vector.load %arg6[%c0_2, %c0_3] : memref<1x128xf32, #tpu.memory_space<vmem>>, vector<1x128xf32>
    %5 = vector.shape_cast %4 : vector<1x128xf32> to vector<1x128xf32>
    %6 = vector.broadcast %5 : vector<1x128xf32> to vector<8x128xf32>
    %c0_4 = arith.constant 0 : index
    %c0_5 = arith.constant 0 : index
    %7 = vector.load %arg7[%c0_4, %c0_5] : memref<1x32xf32, #tpu.memory_space<vmem>>, vector<1x32xf32>
    %8 = vector.shape_cast %7 : vector<1x32xf32> to vector<1x32xf32>
    %9 = vector.broadcast %8 : vector<1x32xf32> to vector<8x32xf32>
    %c0_6 = arith.constant 0 : index
    %c0_7 = arith.constant 0 : index
    %10 = vector.load %arg8[%c0_6, %c0_7] : memref<1x1xf32, #tpu.memory_space<vmem>>, vector<1x1xf32>
    %11 = vector.shape_cast %10 : vector<1x1xf32> to vector<1x1xf32>
    %12 = vector.broadcast %11 : vector<1x1xf32> to vector<8x1xf32>
    %13 = tpu.iota {dimensions = array<i32: 1>} : vector<8x128xi32>
    %c0_8 = arith.constant 0 : index
    %c0_9 = arith.constant 0 : index
    %14 = vector.load %arg10[%c0_8, %c0_9] : memref<8x128xf32, #tpu.memory_space<vmem>>, vector<8x128xf32>
    %c0_10 = arith.constant 0 : index
    %c0_11 = arith.constant 0 : index
    %15 = vector.load %arg11[%c0_10, %c0_11] : memref<8x32xf32, #tpu.memory_space<vmem>>, vector<8x32xf32>
    %cst = arith.constant 0.000000e+00 : f32
    %16 = vector.broadcast %cst : f32 to vector<8x128xf32>
    %c0_i32_12 = arith.constant 0 : i32
    %17 = arith.addf %14, %6 : vector<8x128xf32>
    %18 = arith.negf %17 : vector<8x128xf32>
    %19 = math.exp %18 : vector<8x128xf32>
    %cst_13 = arith.constant 1.000000e+00 : f32
    %20 = vector.broadcast %cst_13 : f32 to vector<8x128xf32>
    %21 = arith.addf %20, %19 : vector<8x128xf32>
    %22 = arith.divf %20, %21 : vector<8x128xf32>
    %23 = math.tanh %17 : vector<8x128xf32>
    %24 = vector.extract_strided_slice %22 {offsets = [0, 0], sizes = [8, 32], strides = [1, 1]} : vector<8x128xf32> to vector<8x32xf32>
    %25 = vector.extract_strided_slice %22 {offsets = [0, 32], sizes = [8, 32], strides = [1, 1]} : vector<8x128xf32> to vector<8x32xf32>
    %26 = vector.extract_strided_slice %23 {offsets = [0, 64], sizes = [8, 32], strides = [1, 1]} : vector<8x128xf32> to vector<8x32xf32>
    %27 = vector.extract_strided_slice %22 {offsets = [0, 96], sizes = [8, 32], strides = [1, 1]} : vector<8x128xf32> to vector<8x32xf32>
    %28 = arith.mulf %25, %15 : vector<8x32xf32>
    %29 = arith.mulf %24, %26 : vector<8x32xf32>
    %30 = arith.addf %28, %29 : vector<8x32xf32>
    %31 = math.tanh %30 : vector<8x32xf32>
    %32 = arith.mulf %27, %31 : vector<8x32xf32>
    %33 = arith.mulf %32, %9 : vector<8x32xf32>
    %cst_14 = arith.constant dense<0.000000e+00> : vector<8xf32>
    %34 = vector.multi_reduction <add>, %33, %cst_14 [1] : vector<8x32xf32> to vector<8xf32>
    %35 = vector.shape_cast %34 : vector<8xf32> to vector<8x1xf32>
    %36 = arith.addf %35, %12 : vector<8x1xf32>
    %37 = vector.broadcast %c0_i32_12 : i32 to vector<8x128xi32>
    %38 = arith.cmpi eq, %13, %37 : vector<8x128xi32>
    %39 = vector.shape_cast %36 : vector<8x1xf32> to vector<8x1xf32>
    %40 = vector.broadcast %39 : vector<8x1xf32> to vector<8x128xf32>
    %41 = arith.select %38, %40, %16 : vector<8x128xi1>, vector<8x128xf32>
    %cst_15 = arith.constant dense<0.000000e+00> : vector<8x128xf32>
    %42 = tpu.matmul %32, %3, %cst_15 {dimension_numbers = #tpu.dot_dimension_numbers<[1], [0], [0], [1], [0, 0, 1, 1], [], []>} : vector<8x32xf32>, vector<32x128xf32>, vector<8x128xf32> -> vector<8x128xf32>
    %c1_i32 = arith.constant 1 : i32
    %43 = arith.addf %42, %6 : vector<8x128xf32>
    %44 = arith.negf %43 : vector<8x128xf32>
    %45 = math.exp %44 : vector<8x128xf32>
    %cst_16 = arith.constant 1.000000e+00 : f32
    %46 = vector.broadcast %cst_16 : f32 to vector<8x128xf32>
    %47 = arith.addf %46, %45 : vector<8x128xf32>
    %48 = arith.divf %46, %47 : vector<8x128xf32>
    %49 = math.tanh %43 : vector<8x128xf32>
    %50 = vector.extract_strided_slice %48 {offsets = [0, 0], sizes = [8, 32], strides = [1, 1]} : vector<8x128xf32> to vector<8x32xf32>
    %51 = vector.extract_strided_slice %48 {offsets = [0, 32], sizes = [8, 32], strides = [1, 1]} : vector<8x128xf32> to vector<8x32xf32>
    %52 = vector.extract_strided_slice %49 {offsets = [0, 64], sizes = [8, 32], strides = [1, 1]} : vector<8x128xf32> to vector<8x32xf32>
    %53 = vector.extract_strided_slice %48 {offsets = [0, 96], sizes = [8, 32], strides = [1, 1]} : vector<8x128xf32> to vector<8x32xf32>
    %54 = arith.mulf %51, %30 : vector<8x32xf32>
    %55 = arith.mulf %50, %52 : vector<8x32xf32>
    %56 = arith.addf %54, %55 : vector<8x32xf32>
    %57 = math.tanh %56 : vector<8x32xf32>
    %58 = arith.mulf %53, %57 : vector<8x32xf32>
    %59 = arith.mulf %58, %9 : vector<8x32xf32>
    %cst_17 = arith.constant dense<0.000000e+00> : vector<8xf32>
    %60 = vector.multi_reduction <add>, %59, %cst_17 [1] : vector<8x32xf32> to vector<8xf32>
    %61 = vector.shape_cast %60 : vector<8xf32> to vector<8x1xf32>
    %62 = arith.addf %61, %12 : vector<8x1xf32>
    %63 = vector.broadcast %c1_i32 : i32 to vector<8x128xi32>
    %64 = arith.cmpi eq, %13, %63 : vector<8x128xi32>
    %65 = vector.shape_cast %62 : vector<8x1xf32> to vector<8x1xf32>
    %66 = vector.broadcast %65 : vector<8x1xf32> to vector<8x128xf32>
    %67 = arith.select %64, %66, %41 : vector<8x128xi1>, vector<8x128xf32>
    %cst_18 = arith.constant dense<0.000000e+00> : vector<8x128xf32>
    %68 = tpu.matmul %58, %3, %cst_18 {dimension_numbers = #tpu.dot_dimension_numbers<[1], [0], [0], [1], [0, 0, 1, 1], [], []>} : vector<8x32xf32>, vector<32x128xf32>, vector<8x128xf32> -> vector<8x128xf32>
    %c2_i32 = arith.constant 2 : i32
    %69 = arith.addf %68, %6 : vector<8x128xf32>
    %70 = arith.negf %69 : vector<8x128xf32>
    %71 = math.exp %70 : vector<8x128xf32>
    %cst_19 = arith.constant 1.000000e+00 : f32
    %72 = vector.broadcast %cst_19 : f32 to vector<8x128xf32>
    %73 = arith.addf %72, %71 : vector<8x128xf32>
    %74 = arith.divf %72, %73 : vector<8x128xf32>
    %75 = math.tanh %69 : vector<8x128xf32>
    %76 = vector.extract_strided_slice %74 {offsets = [0, 0], sizes = [8, 32], strides = [1, 1]} : vector<8x128xf32> to vector<8x32xf32>
    %77 = vector.extract_strided_slice %74 {offsets = [0, 32], sizes = [8, 32], strides = [1, 1]} : vector<8x128xf32> to vector<8x32xf32>
    %78 = vector.extract_strided_slice %75 {offsets = [0, 64], sizes = [8, 32], strides = [1, 1]} : vector<8x128xf32> to vector<8x32xf32>
    %79 = vector.extract_strided_slice %74 {offsets = [0, 96], sizes = [8, 32], strides = [1, 1]} : vector<8x128xf32> to vector<8x32xf32>
    %80 = arith.mulf %77, %56 : vector<8x32xf32>
    %81 = arith.mulf %76, %78 : vector<8x32xf32>
    %82 = arith.addf %80, %81 : vector<8x32xf32>
    %83 = math.tanh %82 : vector<8x32xf32>
    %84 = arith.mulf %79, %83 : vector<8x32xf32>
    %85 = arith.mulf %84, %9 : vector<8x32xf32>
    %cst_20 = arith.constant dense<0.000000e+00> : vector<8xf32>
    %86 = vector.multi_reduction <add>, %85, %cst_20 [1] : vector<8x32xf32> to vector<8xf32>
    %87 = vector.shape_cast %86 : vector<8xf32> to vector<8x1xf32>
    %88 = arith.addf %87, %12 : vector<8x1xf32>
    %89 = vector.broadcast %c2_i32 : i32 to vector<8x128xi32>
    %90 = arith.cmpi eq, %13, %89 : vector<8x128xi32>
    %91 = vector.shape_cast %88 : vector<8x1xf32> to vector<8x1xf32>
    %92 = vector.broadcast %91 : vector<8x1xf32> to vector<8x128xf32>
    %93 = arith.select %90, %92, %67 : vector<8x128xi1>, vector<8x128xf32>
    %cst_21 = arith.constant dense<0.000000e+00> : vector<8x128xf32>
    %94 = tpu.matmul %84, %3, %cst_21 {dimension_numbers = #tpu.dot_dimension_numbers<[1], [0], [0], [1], [0, 0, 1, 1], [], []>} : vector<8x32xf32>, vector<32x128xf32>, vector<8x128xf32> -> vector<8x128xf32>
    %c3_i32 = arith.constant 3 : i32
    %95 = arith.addf %94, %6 : vector<8x128xf32>
    %96 = arith.negf %95 : vector<8x128xf32>
    %97 = math.exp %96 : vector<8x128xf32>
    %cst_22 = arith.constant 1.000000e+00 : f32
    %98 = vector.broadcast %cst_22 : f32 to vector<8x128xf32>
    %99 = arith.addf %98, %97 : vector<8x128xf32>
    %100 = arith.divf %98, %99 : vector<8x128xf32>
    %101 = math.tanh %95 : vector<8x128xf32>
    %102 = vector.extract_strided_slice %100 {offsets = [0, 0], sizes = [8, 32], strides = [1, 1]} : vector<8x128xf32> to vector<8x32xf32>
    %103 = vector.extract_strided_slice %100 {offsets = [0, 32], sizes = [8, 32], strides = [1, 1]} : vector<8x128xf32> to vector<8x32xf32>
    %104 = vector.extract_strided_slice %101 {offsets = [0, 64], sizes = [8, 32], strides = [1, 1]} : vector<8x128xf32> to vector<8x32xf32>
    %105 = vector.extract_strided_slice %100 {offsets = [0, 96], sizes = [8, 32], strides = [1, 1]} : vector<8x128xf32> to vector<8x32xf32>
    %106 = arith.mulf %103, %82 : vector<8x32xf32>
    %107 = arith.mulf %102, %104 : vector<8x32xf32>
    %108 = arith.addf %106, %107 : vector<8x32xf32>
    %109 = math.tanh %108 : vector<8x32xf32>
    %110 = arith.mulf %105, %109 : vector<8x32xf32>
    %111 = arith.mulf %110, %9 : vector<8x32xf32>
    %cst_23 = arith.constant dense<0.000000e+00> : vector<8xf32>
    %112 = vector.multi_reduction <add>, %111, %cst_23 [1] : vector<8x32xf32> to vector<8xf32>
    %113 = vector.shape_cast %112 : vector<8xf32> to vector<8x1xf32>
    %114 = arith.addf %113, %12 : vector<8x1xf32>
    %115 = vector.broadcast %c3_i32 : i32 to vector<8x128xi32>
    %116 = arith.cmpi eq, %13, %115 : vector<8x128xi32>
    %117 = vector.shape_cast %114 : vector<8x1xf32> to vector<8x1xf32>
    %118 = vector.broadcast %117 : vector<8x1xf32> to vector<8x128xf32>
    %119 = arith.select %116, %118, %93 : vector<8x128xi1>, vector<8x128xf32>
    %cst_24 = arith.constant dense<0.000000e+00> : vector<8x128xf32>
    %120 = tpu.matmul %110, %3, %cst_24 {dimension_numbers = #tpu.dot_dimension_numbers<[1], [0], [0], [1], [0, 0, 1, 1], [], []>} : vector<8x32xf32>, vector<32x128xf32>, vector<8x128xf32> -> vector<8x128xf32>
    %c4_i32 = arith.constant 4 : i32
    %121 = arith.addf %120, %6 : vector<8x128xf32>
    %122 = arith.negf %121 : vector<8x128xf32>
    %123 = math.exp %122 : vector<8x128xf32>
    %cst_25 = arith.constant 1.000000e+00 : f32
    %124 = vector.broadcast %cst_25 : f32 to vector<8x128xf32>
    %125 = arith.addf %124, %123 : vector<8x128xf32>
    %126 = arith.divf %124, %125 : vector<8x128xf32>
    %127 = math.tanh %121 : vector<8x128xf32>
    %128 = vector.extract_strided_slice %126 {offsets = [0, 0], sizes = [8, 32], strides = [1, 1]} : vector<8x128xf32> to vector<8x32xf32>
    %129 = vector.extract_strided_slice %126 {offsets = [0, 32], sizes = [8, 32], strides = [1, 1]} : vector<8x128xf32> to vector<8x32xf32>
    %130 = vector.extract_strided_slice %127 {offsets = [0, 64], sizes = [8, 32], strides = [1, 1]} : vector<8x128xf32> to vector<8x32xf32>
    %131 = vector.extract_strided_slice %126 {offsets = [0, 96], sizes = [8, 32], strides = [1, 1]} : vector<8x128xf32> to vector<8x32xf32>
    %132 = arith.mulf %129, %108 : vector<8x32xf32>
    %133 = arith.mulf %128, %130 : vector<8x32xf32>
    %134 = arith.addf %132, %133 : vector<8x32xf32>
    %135 = math.tanh %134 : vector<8x32xf32>
    %136 = arith.mulf %131, %135 : vector<8x32xf32>
    %137 = arith.mulf %136, %9 : vector<8x32xf32>
    %cst_26 = arith.constant dense<0.000000e+00> : vector<8xf32>
    %138 = vector.multi_reduction <add>, %137, %cst_26 [1] : vector<8x32xf32> to vector<8xf32>
    %139 = vector.shape_cast %138 : vector<8xf32> to vector<8x1xf32>
    %140 = arith.addf %139, %12 : vector<8x1xf32>
    %141 = vector.broadcast %c4_i32 : i32 to vector<8x128xi32>
    %142 = arith.cmpi eq, %13, %141 : vector<8x128xi32>
    %143 = vector.shape_cast %140 : vector<8x1xf32> to vector<8x1xf32>
    %144 = vector.broadcast %143 : vector<8x1xf32> to vector<8x128xf32>
    %145 = arith.select %142, %144, %119 : vector<8x128xi1>, vector<8x128xf32>
    %cst_27 = arith.constant dense<0.000000e+00> : vector<8x128xf32>
    %146 = tpu.matmul %136, %3, %cst_27 {dimension_numbers = #tpu.dot_dimension_numbers<[1], [0], [0], [1], [0, 0, 1, 1], [], []>} : vector<8x32xf32>, vector<32x128xf32>, vector<8x128xf32> -> vector<8x128xf32>
    %c5_i32 = arith.constant 5 : i32
    %147 = arith.addf %146, %6 : vector<8x128xf32>
    %148 = arith.negf %147 : vector<8x128xf32>
    %149 = math.exp %148 : vector<8x128xf32>
    %cst_28 = arith.constant 1.000000e+00 : f32
    %150 = vector.broadcast %cst_28 : f32 to vector<8x128xf32>
    %151 = arith.addf %150, %149 : vector<8x128xf32>
    %152 = arith.divf %150, %151 : vector<8x128xf32>
    %153 = math.tanh %147 : vector<8x128xf32>
    %154 = vector.extract_strided_slice %152 {offsets = [0, 0], sizes = [8, 32], strides = [1, 1]} : vector<8x128xf32> to vector<8x32xf32>
    %155 = vector.extract_strided_slice %152 {offsets = [0, 32], sizes = [8, 32], strides = [1, 1]} : vector<8x128xf32> to vector<8x32xf32>
    %156 = vector.extract_strided_slice %153 {offsets = [0, 64], sizes = [8, 32], strides = [1, 1]} : vector<8x128xf32> to vector<8x32xf32>
    %157 = vector.extract_strided_slice %152 {offsets = [0, 96], sizes = [8, 32], strides = [1, 1]} : vector<8x128xf32> to vector<8x32xf32>
    %158 = arith.mulf %155, %134 : vector<8x32xf32>
    %159 = arith.mulf %154, %156 : vector<8x32xf32>
    %160 = arith.addf %158, %159 : vector<8x32xf32>
    %161 = math.tanh %160 : vector<8x32xf32>
    %162 = arith.mulf %157, %161 : vector<8x32xf32>
    %163 = arith.mulf %162, %9 : vector<8x32xf32>
    %cst_29 = arith.constant dense<0.000000e+00> : vector<8xf32>
    %164 = vector.multi_reduction <add>, %163, %cst_29 [1] : vector<8x32xf32> to vector<8xf32>
    %165 = vector.shape_cast %164 : vector<8xf32> to vector<8x1xf32>
    %166 = arith.addf %165, %12 : vector<8x1xf32>
    %167 = vector.broadcast %c5_i32 : i32 to vector<8x128xi32>
    %168 = arith.cmpi eq, %13, %167 : vector<8x128xi32>
    %169 = vector.shape_cast %166 : vector<8x1xf32> to vector<8x1xf32>
    %170 = vector.broadcast %169 : vector<8x1xf32> to vector<8x128xf32>
    %171 = arith.select %168, %170, %145 : vector<8x128xi1>, vector<8x128xf32>
    %cst_30 = arith.constant dense<0.000000e+00> : vector<8x128xf32>
    %172 = tpu.matmul %162, %3, %cst_30 {dimension_numbers = #tpu.dot_dimension_numbers<[1], [0], [0], [1], [0, 0, 1, 1], [], []>} : vector<8x32xf32>, vector<32x128xf32>, vector<8x128xf32> -> vector<8x128xf32>
    %c6_i32 = arith.constant 6 : i32
    %173 = arith.addf %172, %6 : vector<8x128xf32>
    %174 = arith.negf %173 : vector<8x128xf32>
    %175 = math.exp %174 : vector<8x128xf32>
    %cst_31 = arith.constant 1.000000e+00 : f32
    %176 = vector.broadcast %cst_31 : f32 to vector<8x128xf32>
    %177 = arith.addf %176, %175 : vector<8x128xf32>
    %178 = arith.divf %176, %177 : vector<8x128xf32>
    %179 = math.tanh %173 : vector<8x128xf32>
    %180 = vector.extract_strided_slice %178 {offsets = [0, 0], sizes = [8, 32], strides = [1, 1]} : vector<8x128xf32> to vector<8x32xf32>
    %181 = vector.extract_strided_slice %178 {offsets = [0, 32], sizes = [8, 32], strides = [1, 1]} : vector<8x128xf32> to vector<8x32xf32>
    %182 = vector.extract_strided_slice %179 {offsets = [0, 64], sizes = [8, 32], strides = [1, 1]} : vector<8x128xf32> to vector<8x32xf32>
    %183 = vector.extract_strided_slice %178 {offsets = [0, 96], sizes = [8, 32], strides = [1, 1]} : vector<8x128xf32> to vector<8x32xf32>
    %184 = arith.mulf %181, %160 : vector<8x32xf32>
    %185 = arith.mulf %180, %182 : vector<8x32xf32>
    %186 = arith.addf %184, %185 : vector<8x32xf32>
    %187 = math.tanh %186 : vector<8x32xf32>
    %188 = arith.mulf %183, %187 : vector<8x32xf32>
    %189 = arith.mulf %188, %9 : vector<8x32xf32>
    %cst_32 = arith.constant dense<0.000000e+00> : vector<8xf32>
    %190 = vector.multi_reduction <add>, %189, %cst_32 [1] : vector<8x32xf32> to vector<8xf32>
    %191 = vector.shape_cast %190 : vector<8xf32> to vector<8x1xf32>
    %192 = arith.addf %191, %12 : vector<8x1xf32>
    %193 = vector.broadcast %c6_i32 : i32 to vector<8x128xi32>
    %194 = arith.cmpi eq, %13, %193 : vector<8x128xi32>
    %195 = vector.shape_cast %192 : vector<8x1xf32> to vector<8x1xf32>
    %196 = vector.broadcast %195 : vector<8x1xf32> to vector<8x128xf32>
    %197 = arith.select %194, %196, %171 : vector<8x128xi1>, vector<8x128xf32>
    %cst_33 = arith.constant dense<0.000000e+00> : vector<8x128xf32>
    %198 = tpu.matmul %188, %3, %cst_33 {dimension_numbers = #tpu.dot_dimension_numbers<[1], [0], [0], [1], [0, 0, 1, 1], [], []>} : vector<8x32xf32>, vector<32x128xf32>, vector<8x128xf32> -> vector<8x128xf32>
    %c7_i32 = arith.constant 7 : i32
    %199 = arith.addf %198, %6 : vector<8x128xf32>
    %200 = arith.negf %199 : vector<8x128xf32>
    %201 = math.exp %200 : vector<8x128xf32>
    %cst_34 = arith.constant 1.000000e+00 : f32
    %202 = vector.broadcast %cst_34 : f32 to vector<8x128xf32>
    %203 = arith.addf %202, %201 : vector<8x128xf32>
    %204 = arith.divf %202, %203 : vector<8x128xf32>
    %205 = math.tanh %199 : vector<8x128xf32>
    %206 = vector.extract_strided_slice %204 {offsets = [0, 0], sizes = [8, 32], strides = [1, 1]} : vector<8x128xf32> to vector<8x32xf32>
    %207 = vector.extract_strided_slice %204 {offsets = [0, 32], sizes = [8, 32], strides = [1, 1]} : vector<8x128xf32> to vector<8x32xf32>
    %208 = vector.extract_strided_slice %205 {offsets = [0, 64], sizes = [8, 32], strides = [1, 1]} : vector<8x128xf32> to vector<8x32xf32>
    %209 = vector.extract_strided_slice %204 {offsets = [0, 96], sizes = [8, 32], strides = [1, 1]} : vector<8x128xf32> to vector<8x32xf32>
    %210 = arith.mulf %207, %186 : vector<8x32xf32>
    %211 = arith.mulf %206, %208 : vector<8x32xf32>
    %212 = arith.addf %210, %211 : vector<8x32xf32>
    %213 = math.tanh %212 : vector<8x32xf32>
    %214 = arith.mulf %209, %213 : vector<8x32xf32>
    %215 = arith.mulf %214, %9 : vector<8x32xf32>
    %cst_35 = arith.constant dense<0.000000e+00> : vector<8xf32>
    %216 = vector.multi_reduction <add>, %215, %cst_35 [1] : vector<8x32xf32> to vector<8xf32>
    %217 = vector.shape_cast %216 : vector<8xf32> to vector<8x1xf32>
    %218 = arith.addf %217, %12 : vector<8x1xf32>
    %219 = vector.broadcast %c7_i32 : i32 to vector<8x128xi32>
    %220 = arith.cmpi eq, %13, %219 : vector<8x128xi32>
    %221 = vector.shape_cast %218 : vector<8x1xf32> to vector<8x1xf32>
    %222 = vector.broadcast %221 : vector<8x1xf32> to vector<8x128xf32>
    %223 = arith.select %220, %222, %197 : vector<8x128xi1>, vector<8x128xf32>
    %cst_36 = arith.constant dense<0.000000e+00> : vector<8x128xf32>
    %224 = tpu.matmul %214, %3, %cst_36 {dimension_numbers = #tpu.dot_dimension_numbers<[1], [0], [0], [1], [0, 0, 1, 1], [], []>} : vector<8x32xf32>, vector<32x128xf32>, vector<8x128xf32> -> vector<8x128xf32>
    %c8_i32 = arith.constant 8 : i32
    %c0_37 = arith.constant 0 : index
    %c0_38 = arith.constant 0 : index
    %225 = vector.load %arg10[%c0_37, %c0_38] : memref<8x128xf32, #tpu.memory_space<vmem>>, vector<8x128xf32>
    tpu.vector_store %arg10[%c0_37, %c0_38], %224 {strides = array<i32>} : memref<8x128xf32, #tpu.memory_space<vmem>>, vector<8x128xf32>,
    %c0_39 = arith.constant 0 : index
    %c0_40 = arith.constant 0 : index
    %226 = vector.load %arg11[%c0_39, %c0_40] : memref<8x32xf32, #tpu.memory_space<vmem>>, vector<8x32xf32>
    tpu.vector_store %arg11[%c0_39, %c0_40], %212 {strides = array<i32>} : memref<8x32xf32, #tpu.memory_space<vmem>>, vector<8x32xf32>,
    %c0_41 = arith.constant 0 : index
    %c0_42 = arith.constant 0 : index
    %227 = vector.load %arg9[%c0_41, %c0_42] : memref<8x128xf32, #tpu.memory_space<vmem>>, vector<8x128xf32>
    tpu.vector_store %arg9[%c0_41, %c0_42], %223 {strides = array<i32>} : memref<8x128xf32, #tpu.memory_space<vmem>>, vector<8x128xf32>,
    return
  }
  func.func @transform_0(%arg0: i32) -> (i32, i32) {
    %c0_i32 = arith.constant 0 : i32
    %c0_i32_0 = arith.constant 0 : i32
    %c0_i32_1 = arith.constant 0 : i32
    return %c0_i32, %c0_i32_0 : i32, i32
  }
  func.func @transform_1(%arg0: i32) -> (i32, i32) {
    %c0_i32 = arith.constant 0 : i32
    %c0_i32_0 = arith.constant 0 : i32
    %c0_i32_1 = arith.constant 0 : i32
    return %c0_i32, %c0_i32_0 : i32, i32
  }
  func.func @transform_2(%arg0: i32) -> (i32, i32) {
    %c0_i32 = arith.constant 0 : i32
    %c0_i32_0 = arith.constant 0 : i32
    %c0_i32_1 = arith.constant 0 : i32
    return %c0_i32, %c0_i32_0 : i32, i32
  }
  func.func @transform_3(%arg0: i32) -> (i32, i32) {
    %c0_i32 = arith.constant 0 : i32
    %c0_i32_0 = arith.constant 0 : i32
    %c0_i32_1 = arith.constant 0 : i32
    return %c0_i32, %c0_i32_0 : i32, i32
  }
  func.func @transform_4(%arg0: i32) -> (i32, i32) {
    %c0_i32 = arith.constant 0 : i32
    %c0_i32_0 = arith.constant 0 : i32
    %c0_i32_1 = arith.constant 0 : i32
    return %c0_i32, %c0_i32_0 : i32, i32
  }
  func.func @transform_5(%arg0: i32) -> (i32, i32) {
    %c0_i32 = arith.constant 0 : i32
    %c0_i32_0 = arith.constant 0 : i32
    %c0_i32_1 = arith.constant 0 : i32
    return %c0_i32, %c0_i32_0 : i32, i32
  }
  func.func @transform_6(%arg0: i32) -> (i32, i32) {
    %c0_i32 = arith.constant 0 : i32
    %c0_i32_0 = arith.constant 0 : i32
    %c0_i32_1 = arith.constant 0 : i32
    return %c0_i32, %c0_i32_0 : i32, i32
  }
  func.func @transform_7(%arg0: i32) -> (i32, i32) {
    %c0_i32 = arith.constant 0 : i32
    %c0_i32_0 = arith.constant 0 : i32
    %c0_i32_1 = arith.constant 0 : i32
    return %c0_i32, %c0_i32_0 : i32, i32
  }
  func.func @transform_8(%arg0: i32) -> (i32, i32) {
    %c0_i32 = arith.constant 0 : i32
    %c0_i32_0 = arith.constant 0 : i32
    return %c0_i32, %arg0 : i32, i32
  }
}

</mosaic_0001>

<bundles_post_ra>
// kernel: tpu_custom_call.1
= control target key start
LH: loop header
LB: loop body
LE: loop exit
PB: predicated region body
PF: predicated region fallthrough
CT: control target
= control target key end

     0   :  { %s1861_s0 = inlined_call_operand.hbm [shape: f32[8,32], index: 0, kind: input, shape index: {}]   ;;  %s1862_s1 = inlined_call_operand.hbm [shape: f32[8,32], index: 1, kind: input, shape index: {}]   ;;  %s1863_s2 = inlined_call_operand.hbm [shape: f32[32,128], index: 2, kind: input, shape index: {}]   ;;  %s1864_s3 = inlined_call_operand.vmem [shape: f32[1,128], index: 3, kind: input, shape index: {}]   ;;  %s1865_s4 = inlined_call_operand.hbm [shape: f32[32,128], index: 4, kind: input, shape index: {}]   ;;  %s1866_s5 = inlined_call_operand.vmem [shape: f32[1,128], index: 5, kind: input, shape index: {}]   ;;  %s1867_s6 = inlined_call_operand.vmem [shape: f32[1,32], index: 6, kind: input, shape index: {}]   ;;  %s1868_s7 = inlined_call_operand.<no memory space> [shape: f32[1,1], index: 7, kind: input, shape index: {}]   ;;  %s1869_s8 = inlined_call_operand.hbm [shape: f32[8,128], index: 8, kind: output, shape index: {}]  }
   0x1   :  { %v13_v0 = vstv %s1868_s7 }
   0x2   :  { %14 = vst [vmem:[#allocation4] sm:$0x1] %v13_v0 }
   0x3   :  { %15 = vsyncpa [#allocation6], 0 }
   0x4   :  { %16 = vsyncpa [#allocation9], 0 }
   0x5   :  { %17 = vsyncpa [#allocation12], 0 }
   0x6   :  { %18 = vsyncpa [#allocation7], 0  ;;  %s1574_s29 = smov [#allocation8]   ;;  %s1575_s9 = smov [#allocation5]  }
   0x7   :  { %s35_s30 = sshll.u32 %s1574_s29, 4  ;;  %s25_s10 = sshll.u32 %s1575_s9, 4  ;;  %s36_s30 = int_to_ptr.vmem [resolvable:$true] %s35_s30  ;;  %s26_s10 = int_to_ptr.vmem [resolvable:$true] %s25_s10 }
   0x8   :  { %s1456_s13 = scalar_lea.hbm %s1862_s1, 128 }
   0x9   :  { %p1457_p0 = scmp.ne.s32.totalorder %s1862_s1, %s1456_s13  ;;  %p1460_p1 = scmp.lt.u32.totalorder %s1456_s13, %s1862_s1 }
   0xb   :  { %p1462_p2 = pnand %p1460_p1, %p1457_p0 }
   0xd   :  { %1465 = shalt.err (!%p1462_p2)
}
   0xe   :  { %s1466_s17 = scalar_lea.vmem %s36_s30, 128  ;;  %p1471_p4 = scmp.lt.s32.totalorder %s36_s30, %s36_s30 }
   0xf   :  { %p1467_p3 = scmp.ne.s32.totalorder %s36_s30, %s1466_s17  ;;  %p1472_p5 = scmp.lt.s32.totalorder %s1466_s17, %s1466_s17 }
  0x11   :  { %p1473_p6 = por %p1472_p5, %p1471_p4 }
  0x13   :  { %p1474_p7 = pnand %p1473_p6, %p1467_p3 }
  0x15   :  { %1477 = shalt.err (!%p1474_p7)
}
  0x16   :  { %38 = dma.hbm_to_vmem [thread:$0]  %s1862_s1, 128, %s36_s30, [#allocation9]  }
  0x17   :  { %s1478_s22 = scalar_lea.hbm %s1861_s0, 128 }
  0x18   :  { %p1479_p8 = scmp.ne.s32.totalorder %s1861_s0, %s1478_s22  ;;  %p1482_p9 = scmp.lt.u32.totalorder %s1478_s22, %s1861_s0 }
  0x1a   :  { %p1484_p10 = pnand %p1482_p9, %p1479_p8 }
  0x1c   :  { %1487 = shalt.err (!%p1484_p10)
}
  0x1d   :  { %s1488_s27 = scalar_lea.vmem %s26_s10, 128  ;;  %p1493_p12 = scmp.lt.s32.totalorder %s26_s10, %s26_s10 }
  0x1e   :  { %p1489_p11 = scmp.ne.s32.totalorder %s26_s10, %s1488_s27  ;;  %p1494_p13 = scmp.lt.s32.totalorder %s1488_s27, %s1488_s27 }
  0x20   :  { %p1495_p0 = por %p1494_p13, %p1493_p12 }
  0x22   :  { %p1496_p1 = pnand %p1495_p0, %p1489_p11 }
  0x24   :  { %1499 = shalt.err (!%p1496_p1)
}
  0x25   :  { %28 = dma.hbm_to_vmem [thread:$0]  %s1861_s0, 128, %s26_s10, [#allocation6]  }
  0x26   :  { %s1576_s29 = smov [#allocation10]   ;;  %s1500_s12 = scalar_lea.hbm %s1863_s2, 512 }
  0x27   :  { %s44_s30 = sshll.u32 %s1576_s29, 4  ;;  %p1501_p2 = scmp.ne.s32.totalorder %s1863_s2, %s1500_s12  ;;  %s45_s30 = int_to_ptr.vmem [resolvable:$true] %s44_s30 }
  0x28   :  { %p1504_p3 = scmp.lt.u32.totalorder %s1500_s12, %s1863_s2 }
  0x2a   :  { %p1506_p4 = pnand %p1504_p3, %p1501_p2 }
  0x2c   :  { %1509 = shalt.err (!%p1506_p4)
}
  0x2d   :  { %s1510_s16 = scalar_lea.vmem %s45_s30, 512  ;;  %p1515_p6 = scmp.lt.s32.totalorder %s45_s30, %s45_s30 }
  0x2e   :  { %p1511_p5 = scmp.ne.s32.totalorder %s45_s30, %s1510_s16  ;;  %p1516_p7 = scmp.lt.s32.totalorder %s1510_s16, %s1510_s16 }
  0x30   :  { %p1517_p8 = por %p1516_p7, %p1515_p6 }
  0x32   :  { %p1518_p9 = pnand %p1517_p8, %p1511_p5 }
  0x34   :  { %1521 = shalt.err (!%p1518_p9)
}
  0x35   :  { %s1577_s0 = smov 128   ;;  %s1578_s10 = smov 8  }
  0x36   :  { %50 = dma.hbm_to_vmem [thread:$0]  %s1863_s2, 512, %s45_s30, [#allocation9], %s1577_s0, %s1577_s0, %s1578_s10  }
  0x37   :  { %s1579_s19 = smov [#allocation11]   ;;  %s1522_s23 = scalar_lea.hbm %s1865_s4, 512 }
  0x38   :  { %s58_s20 = sshll.u32 %s1579_s19, 4  ;;  %p1523_p10 = scmp.ne.s32.totalorder %s1865_s4, %s1522_s23  ;;  %s59_s20 = int_to_ptr.vmem [resolvable:$true] %s58_s20 }
  0x39   :  { %p1526_p11 = scmp.lt.u32.totalorder %s1522_s23, %s1865_s4 }
  0x3b   :  { %p1528_p12 = pnand %p1526_p11, %p1523_p10 }
  0x3d   :  { %1531 = shalt.err (!%p1528_p12)
}
  0x3e   :  { %s1532_s1 = scalar_lea.vmem %s59_s20, 512  ;;  %p1537_p0 = scmp.lt.s32.totalorder %s59_s20, %s59_s20 }
  0x3f   :  { %p1533_p13 = scmp.ne.s32.totalorder %s59_s20, %s1532_s1  ;;  %p1538_p1 = scmp.lt.s32.totalorder %s1532_s1, %s1532_s1 }
  0x41   :  { %p1539_p2 = por %p1538_p1, %p1537_p0 }
  0x43   :  { %p1540_p3 = pnand %p1539_p2, %p1533_p13 }
  0x45   :  { %1543 = shalt.err (!%p1540_p3)
}
  0x46   :  { %64 = dma.hbm_to_vmem [thread:$0]  %s1865_s4, 512, %s59_s20, [#allocation12], %s1577_s0, %s1577_s0, %s1578_s10  }
  0x47   :  { %1566 = dma.done.wait [#allocation6], 128  }
  0x48   :  { %1567 = vsyncadd [#allocation6], 4294967168 }
  0x49   :  { %1568 = dma.done.wait [#allocation9], 640  }
  0x4a   :  { %1569 = vsyncadd [#allocation9], 4294966656 }
  0x4b   :  { %1570 = dma.done.wait [#allocation12], 512  }
  0x4c   :  { %1571 = vsyncadd [#allocation12], 4294966784  ;;  %v1580_v1 = vmov 0.0|0.0   ;;  %vm1581_vm0 = vmmov 0   ;;  %v1582_v2 = vmov 0.0   ;;  %v88_v3 = vld [vmem:[#allocation10] sm:$0xff] }
  0x4d   :  { %1322 = vmatprep.subr.bf16.mxu0 %v1580_v1  ;;  %1231 = vmatprep.mubr.msk.f32.mxu0 %vm1581_vm0, %v1582_v2  ;;  %v89_v4 = vld [vmem:[#allocation10 + $0x8] sm:$0xff]  ;;  %v90_v5 = vld [vmem:[#allocation10 + $0x10] sm:$0xff]  ;;  %v91_v7 = vld [vmem:[#allocation10 + $0x18] sm:$0xff]  ;;  %vm99_vm1 = vcmask 261120   ;;  %s1583_s11 = smov 64   ;;  %s1584_s12 = smov 32  }
  0x4e   :  { %1328 = vmatprep.subr.bf16.mxu1 %v1580_v1  ;;  %1242 = vmatprep.mubr.msk.f32.mxu1 %vm1581_vm0, %v1582_v2  ;;  %v1323_v6 = vpack.c.bf16 %v89_v4, %v88_v3  ;;  %v1326_v8 = vpack.c.bf16 %v91_v7, %v90_v5  ;;  %v87_v9 = vld [vmem:[#allocation5] sm:$0xff]  ;;  %v174_v10 = vld [vmem:[#allocation8] sm:$0xff]  ;;  %v1157_v11 = vld [vmem:[%s1864_s3] ss:$0 sm:$0xff]  ;;  %s1585_s13 = smov 96  }
  0x4f   :  { %175 = vst.msk [vmem:[#allocation3] sm:$0xff] %vm99_vm1, %v174_v10  ;;  %v1702_v13 = vld [vmem:[%s1866_s5] ss:$0 sm:$0xff]  ;;  %v177_v30 = vld [vmem:[#allocation11 + $0x8] sm:$0xff]  ;;  %v178_v31 = vld [vmem:[#allocation11 + $0x10] sm:$0xff] }
  0x50   :  { %1324 = vmatpush3.bf16.msra.mxu0 %v1323_v6  ;;  %v176_v29 = vld [vmem:[#allocation11] sm:$0xff]  ;;  %v179_v33 = vld [vmem:[#allocation11 + $0x18] sm:$0xff] }
  0x51   :  { %1325 = vmatprep.subr.bf16.mxu0 %v1580_v1  ;;  %v1708_v32 = vpack.c.bf16 %v177_v30, %v176_v29  ;;  %v1711_v34 = vpack.c.bf16 %v179_v33, %v178_v31 }
  0x53   :  { %1330 = vmatpush3.bf16.msra.mxu1 %v1708_v32 }
  0x54   :  { %1327 = vmatpush3.bf16.msra.mxu0 %v1326_v8  ;;  %1331 = vmatprep.subr.bf16.mxu1 %v1580_v1 }
  0x55   :  { %1334 = vmatprep.subr.bf16.mxu0 %v1580_v1 }
  0x56   :  { %v203_v18 = vld [vmem:[#allocation3] sm:$0xff] }
  0x57   :  { %1232 = vmatmul.mubr.msk.f32.vlgmr.msra.gmra.mrb[0].mxu0 %vm99_vm1, %v87_v9  ;;  %1333 = vmatpush3.bf16.msra.mxu1 %v1711_v34 }
  0x58   :  { %1253 = vmatprep.mubr.msk.f32.mxu0 %vm1581_vm0, %v1582_v2  ;;  %1336 = vmatpush3.bf16.msra.mxu0 %v1708_v32 }
  0x59   :  { %1337 = vmatprep.subr.bf16.mxu0 %v1580_v1  ;;  %1340 = vmatprep.subr.bf16.mxu1 %v1580_v1 }
  0x5c   :  { %1339 = vmatpush3.bf16.msra.mxu0 %v1711_v34 }
  0x5d   :  { %1346 = vmatprep.subr.bf16.mxu0 %v1580_v1 }
 0x12a   :  { %v169_v12 = vpop.f32.mrb[0].mxu0 }
 0x12b   :  { %v170_v14 = vadd.f32 %v1157_v11, %v169_v12  ;;  %v1233_v15 = vpop.f32.mrb[1].mxu0 }
 0x12d   :  { %v204_v16 = vadd.f32 %v1702_v13, %v170_v14 }
 0x12f   :  { %1392 = vtanh.f32 %v204_v16  ;;  %v1162_v19 = vmul.f32 -1.442695, %v204_v16 }
 0x131   :  { %1394 = vpow2.f32 %v1162_v19 }
 0x139   :  { %v1393_v17 = vpop.eup %1392 }
 0x13a   :  { %218 = vrot.lane.b32.xlu0 %v1393_v17, %s1583_s11 }
 0x13b   :  { %v1395_v20 = vpop.eup %1394 }
 0x13c   :  { %v208_v21 = vadd.f32 1.0, %v1395_v20 }
 0x13e   :  { %213 = vrot.lane.b32.xlu0 %v203_v18, %s1584_s12  ;;  %1396 = vrcp.f32 %v208_v21 }
 0x148   :  { %v1397_v22 = vpop.eup %1396 }
 0x1ac   :  { %v219_v23 = vpop.permute.xlu0 %218 }
 0x1ad   :  { %v221_v24 = vmul.f32 %v1397_v22, %v219_v23 }
 0x1af   :  { %223 = vrot.lane.b32.xlu1 %v221_v24, %s1584_s12 }
 0x1b0   :  { %v214_v25 = vpop.permute.xlu0 %213 }
 0x1b1   :  { %v216_v26 = vmul.f32 %v1397_v22, %v214_v25 }
 0x221   :  { %v224_v27 = vpop.permute.xlu1 %223 }
 0x222   :  { %v226_v28 = vadd.f32 %v224_v27, %v216_v26 }
 0x224   :  { %1398 = vtanh.f32 %v226_v28 }
 0x22e   :  { %v1399_v35 = vpop.eup %1398 }
 0x22f   :  { %229 = vrot.lane.b32.xlu1 %v1399_v35, %s1583_s11 }
 0x2a1   :  { %v230_v36 = vpop.permute.xlu1 %229 }
 0x2a2   :  { %v1721_v37 = vmul.f32 %v1397_v22, %v230_v36 }
 0x2a4   :  { %254 = vrot.lane.b32.xlu0 %v1721_v37, %s1584_s12 }
 0x316   :  { %v255_v38 = vpop.permute.xlu0 %254 }
 0x317   :  { %1243 = vmatmul.mubr.msk.f32.vlgmr.msra.gmra.mrb[0].mxu1 %vm99_vm1, %v255_v38 }
 0x318   :  { %1342 = vmatpush3.bf16.msra.mxu1 %v1708_v32  ;;  %1264 = vmatprep.mubr.msk.f32.mxu1 %vm1581_vm0, %v1582_v2 }
 0x319   :  { %1343 = vmatprep.subr.bf16.mxu1 %v1580_v1 }
 0x31c   :  { %1345 = vmatpush3.bf16.msra.mxu1 %v1711_v34 }
 0x31d   :  { %1352 = vmatprep.subr.bf16.mxu1 %v1580_v1 }
 0x3ea   :  { %v324_v39 = vpop.f32.mrb[0].mxu1 }
 0x3eb   :  { %v325_v40 = vadd.f32 %v1702_v13, %v324_v39  ;;  %v1244_v41 = vpop.f32.mrb[1].mxu1 }
 0x3ed   :  { %1400 = vtanh.f32 %v325_v40  ;;  %v1164_v43 = vmul.f32 -1.442695, %v325_v40 }
 0x3ef   :  { %1402 = vpow2.f32 %v1164_v43 }
 0x3f7   :  { %v1401_v42 = vpop.eup %1400 }
 0x3f8   :  { %337 = vrot.lane.b32.xlu1 %v1401_v42, %s1583_s11 }
 0x3f9   :  { %v1403_v44 = vpop.eup %1402 }
 0x3fa   :  { %v331_v45 = vadd.f32 1.0, %v1403_v44 }
 0x3fc   :  { %1404 = vrcp.f32 %v331_v45 }
 0x406   :  { %v1405_v46 = vpop.eup %1404 }
 0x407   :  { %v335_v49 = vmul.f32 %v1405_v46, %v226_v28 }
 0x46a   :  { %v338_v47 = vpop.permute.xlu1 %337 }
 0x46b   :  { %v340_v48 = vmul.f32 %v1405_v46, %v338_v47 }
 0x46d   :  { %342 = vrot.lane.b32.xlu0 %v340_v48, %s1584_s12 }
 0x4df   :  { %v343_v50 = vpop.permute.xlu0 %342 }
 0x4e0   :  { %v345_v51 = vadd.f32 %v343_v50, %v335_v49 }
 0x4e2   :  { %1406 = vtanh.f32 %v345_v51 }
 0x4ec   :  { %v1407_v52 = vpop.eup %1406 }
 0x4ed   :  { %348 = vrot.lane.b32.xlu1 %v1407_v52, %s1583_s11 }
 0x55f   :  { %v349_v53 = vpop.permute.xlu1 %348 }
 0x560   :  { %v1736_v54 = vmul.f32 %v1405_v46, %v349_v53 }
 0x562   :  { %369 = vrot.lane.b32.xlu0 %v1736_v54, %s1584_s12 }
 0x5d4   :  { %v370_v55 = vpop.permute.xlu0 %369 }
 0x5d5   :  { %1254 = vmatmul.mubr.msk.f32.vlgmr.msra.gmra.mrb[2].mxu0 %vm99_vm1, %v370_v55 }
 0x5d6   :  { %1348 = vmatpush3.bf16.msra.mxu0 %v1708_v32  ;;  %1275 = vmatprep.mubr.msk.f32.mxu0 %vm1581_vm0, %v1582_v2 }
 0x5d7   :  { %1349 = vmatprep.subr.bf16.mxu0 %v1580_v1 }
 0x5da   :  { %1351 = vmatpush3.bf16.msra.mxu0 %v1711_v34 }
 0x5db   :  { %1358 = vmatprep.subr.bf16.mxu0 %v1580_v1 }
 0x6a8   :  { %v439_v56 = vpop.f32.mrb[2].mxu0 }
 0x6a9   :  { %v440_v57 = vadd.f32 %v1702_v13, %v439_v56  ;;  %v1255_v58 = vpop.f32.mrb[3].mxu0 }
 0x6ab   :  { %1408 = vtanh.f32 %v440_v57  ;;  %v1166_v60 = vmul.f32 -1.442695, %v440_v57 }
 0x6ad   :  { %1410 = vpow2.f32 %v1166_v60 }
 0x6b5   :  { %v1409_v59 = vpop.eup %1408 }
 0x6b6   :  { %452 = vrot.lane.b32.xlu1 %v1409_v59, %s1583_s11 }
 0x6b7   :  { %v1411_v61 = vpop.eup %1410 }
 0x6b8   :  { %v446_v62 = vadd.f32 1.0, %v1411_v61 }
 0x6ba   :  { %1412 = vrcp.f32 %v446_v62 }
 0x6c4   :  { %v1413_v63 = vpop.eup %1412 }
 0x6c5   :  { %v450_v4 = vmul.f32 %v1413_v63, %v345_v51 }
 0x728   :  { %v453_v0 = vpop.permute.xlu1 %452 }
 0x729   :  { %v455_v3 = vmul.f32 %v1413_v63, %v453_v0 }
 0x72b   :  { %457 = vrot.lane.b32.xlu0 %v455_v3, %s1584_s12 }
 0x79d   :  { %v458_v5 = vpop.permute.xlu0 %457 }
 0x79e   :  { %v460_v6 = vadd.f32 %v458_v5, %v450_v4 }
 0x7a0   :  { %1414 = vtanh.f32 %v460_v6 }
 0x7aa   :  { %v1415_v7 = vpop.eup %1414 }
 0x7ab   :  { %463 = vrot.lane.b32.xlu1 %v1415_v7, %s1583_s11 }
 0x81d   :  { %v464_v8 = vpop.permute.xlu1 %463 }
 0x81e   :  { %v1751_v9 = vmul.f32 %v1413_v63, %v464_v8 }
 0x820   :  { %484 = vrot.lane.b32.xlu0 %v1751_v9, %s1584_s12 }
 0x892   :  { %v485_v10 = vpop.permute.xlu0 %484 }
 0x893   :  { %1265 = vmatmul.mubr.msk.f32.vlgmr.msra.gmra.mrb[2].mxu1 %vm99_vm1, %v485_v10 }
 0x894   :  { %1354 = vmatpush3.bf16.msra.mxu1 %v1708_v32  ;;  %1286 = vmatprep.mubr.msk.f32.mxu1 %vm1581_vm0, %v1582_v2 }
 0x895   :  { %1355 = vmatprep.subr.bf16.mxu1 %v1580_v1 }
 0x898   :  { %1357 = vmatpush3.bf16.msra.mxu1 %v1711_v34 }
 0x899   :  { %1364 = vmatprep.subr.bf16.mxu1 %v1580_v1 }
 0x966   :  { %v554_v11 = vpop.f32.mrb[2].mxu1 }
 0x967   :  { %v555_v12 = vadd.f32 %v1702_v13, %v554_v11  ;;  %v1266_v14 = vpop.f32.mrb[3].mxu1 }
 0x969   :  { %1416 = vtanh.f32 %v555_v12  ;;  %v1168_v16 = vmul.f32 -1.442695, %v555_v12 }
 0x96b   :  { %1418 = vpow2.f32 %v1168_v16 }
 0x973   :  { %v1417_v15 = vpop.eup %1416 }
 0x974   :  { %567 = vrot.lane.b32.xlu1 %v1417_v15, %s1583_s11 }
 0x975   :  { %v1419_v17 = vpop.eup %1418 }
 0x976   :  { %v561_v18 = vadd.f32 1.0, %v1419_v17 }
 0x978   :  { %1420 = vrcp.f32 %v561_v18 }
 0x982   :  { %v1421_v19 = vpop.eup %1420 }
 0x983   :  { %v565_v22 = vmul.f32 %v1421_v19, %v460_v6 }
 0x9e6   :  { %v568_v20 = vpop.permute.xlu1 %567 }
 0x9e7   :  { %v570_v21 = vmul.f32 %v1421_v19, %v568_v20 }
 0x9e9   :  { %572 = vrot.lane.b32.xlu0 %v570_v21, %s1584_s12 }
 0xa5b   :  { %v573_v23 = vpop.permute.xlu0 %572 }
 0xa5c   :  { %v575_v24 = vadd.f32 %v573_v23, %v565_v22 }
 0xa5e   :  { %1422 = vtanh.f32 %v575_v24 }
 0xa68   :  { %v1423_v25 = vpop.eup %1422 }
 0xa69   :  { %578 = vrot.lane.b32.xlu1 %v1423_v25, %s1583_s11 }
 0xadb   :  { %v579_v26 = vpop.permute.xlu1 %578 }
 0xadc   :  { %v1766_v27 = vmul.f32 %v1421_v19, %v579_v26 }
 0xade   :  { %599 = vrot.lane.b32.xlu0 %v1766_v27, %s1584_s12 }
 0xb50   :  { %v600_v28 = vpop.permute.xlu0 %599 }
 0xb51   :  { %1276 = vmatmul.mubr.msk.f32.vlgmr.msra.gmra.mrb[4].mxu0 %vm99_vm1, %v600_v28 }
 0xb52   :  { %1360 = vmatpush3.bf16.msra.mxu0 %v1708_v32  ;;  %1297 = vmatprep.mubr.msk.f32.mxu0 %vm1581_vm0, %v1582_v2 }
 0xb53   :  { %1361 = vmatprep.subr.bf16.mxu0 %v1580_v1 }
 0xb56   :  { %1363 = vmatpush3.bf16.msra.mxu0 %v1711_v34 }
 0xb57   :  { %1370 = vmatprep.subr.bf16.mxu0 %v1580_v1 }
 0xc24   :  { %v669_v29 = vpop.f32.mrb[4].mxu0 }
 0xc25   :  { %v670_v30 = vadd.f32 %v1702_v13, %v669_v29  ;;  %v1277_v31 = vpop.f32.mrb[5].mxu0 }
 0xc26   :  { %v1160_v31 = vld [vmem:[%s1867_s6] ss:$0 sm:$0xff]  ;;  %s1587_s6 = smov [#allocation13]  }
 0xc27   :  { %1424 = vtanh.f32 %v670_v30  ;;  %v1170_v35 = vmul.f32 -1.442695, %v670_v30  ;;  %s1146_s14 = sshll.u32 %s1587_s6, 4  ;;  %s1147_s14 = int_to_ptr.vmem [resolvable:$true] %s1146_s14 }
 0xc28   :  { %s1544_s15 = scalar_lea.vmem %s1147_s14, 128  ;;  %p1549_p5 = scmp.lt.s32.totalorder %s1147_s14, %s1147_s14 }
 0xc29   :  { %1426 = vpow2.f32 %v1170_v35  ;;  %p1545_p4 = scmp.ne.s32.totalorder %s1147_s14, %s1544_s15  ;;  %p1550_p6 = scmp.lt.s32.totalorder %s1544_s15, %s1544_s15 }
 0xc2b   :  { %p1551_p7 = por %p1550_p6, %p1549_p5 }
 0xc2d   :  { %p1552_p8 = pnand %p1551_p7, %p1545_p4 }
 0xc31   :  { %v1425_v33 = vpop.eup %1424 }
 0xc32   :  { %682 = vrot.lane.b32.xlu1 %v1425_v33, %s1583_s11 }
 0xc33   :  { %v1427_v36 = vpop.eup %1426 }
 0xc34   :  { %v676_v38 = vadd.f32 1.0, %v1427_v36 }
 0xc36   :  { %1428 = vrcp.f32 %v676_v38 }
 0xc40   :  { %v1429_v39 = vpop.eup %1428 }
 0xc41   :  { %v680_v42 = vmul.f32 %v1429_v39, %v575_v24 }
 0xca4   :  { %v683_v40 = vpop.permute.xlu1 %682 }
 0xca5   :  { %v685_v41 = vmul.f32 %v1429_v39, %v683_v40 }
 0xca7   :  { %687 = vrot.lane.b32.xlu0 %v685_v41, %s1584_s12 }
 0xd19   :  { %v688_v43 = vpop.permute.xlu0 %687 }
 0xd1a   :  { %v690_v44 = vadd.f32 %v688_v43, %v680_v42 }
 0xd1c   :  { %1430 = vtanh.f32 %v690_v44 }
 0xd26   :  { %v1431_v45 = vpop.eup %1430 }
 0xd27   :  { %693 = vrot.lane.b32.xlu1 %v1431_v45, %s1583_s11 }
 0xd99   :  { %v694_v46 = vpop.permute.xlu1 %693 }
 0xd9a   :  { %v1781_v47 = vmul.f32 %v1429_v39, %v694_v46 }
 0xd9c   :  { %714 = vrot.lane.b32.xlu0 %v1781_v47, %s1584_s12 }
 0xe0e   :  { %v715_v48 = vpop.permute.xlu0 %714 }
 0xe0f   :  { %1287 = vmatmul.mubr.msk.f32.vlgmr.msra.gmra.mrb[4].mxu1 %vm99_vm1, %v715_v48 }
 0xe10   :  { %1366 = vmatpush3.bf16.msra.mxu1 %v1708_v32  ;;  %1308 = vmatprep.mubr.msk.f32.mxu1 %vm1581_vm0, %v1582_v2 }
 0xe11   :  { %1367 = vmatprep.subr.bf16.mxu1 %v1580_v1 }
 0xe14   :  { %1369 = vmatpush3.bf16.msra.mxu1 %v1711_v34 }
 0xee2   :  { %v784_v49 = vpop.f32.mrb[4].mxu1 }
 0xee3   :  { %v785_v50 = vadd.f32 %v1702_v13, %v784_v49  ;;  %v1288_v51 = vpop.f32.mrb[5].mxu1 }
 0xee5   :  { %1432 = vtanh.f32 %v785_v50  ;;  %v1172_v53 = vmul.f32 -1.442695, %v785_v50 }
 0xee7   :  { %1434 = vpow2.f32 %v1172_v53 }
 0xeef   :  { %v1433_v52 = vpop.eup %1432 }
 0xef0   :  { %797 = vrot.lane.b32.xlu1 %v1433_v52, %s1583_s11 }
 0xef1   :  { %v1435_v55 = vpop.eup %1434 }
 0xef2   :  { %v791_v56 = vadd.f32 1.0, %v1435_v55 }
 0xef4   :  { %1436 = vrcp.f32 %v791_v56 }
 0xefe   :  { %v1437_v57 = vpop.eup %1436 }
 0xeff   :  { %v795_v60 = vmul.f32 %v1437_v57, %v690_v44 }
 0xf62   :  { %v798_v58 = vpop.permute.xlu1 %797 }
 0xf63   :  { %v800_v59 = vmul.f32 %v1437_v57, %v798_v58  ;;  %v1586_v58 = vmov 0  }
 0xf64   :  { %1390 = vset.pattern.permute.xlu1 %v1586_v58  ;;  %1391 = vset.pattern.permute.xlu0 %v1586_v58 }
 0xf65   :  { %802 = vrot.lane.b32.xlu0 %v800_v59, %s1584_s12 }
 0xfd7   :  { %v803_v61 = vpop.permute.xlu0 %802 }
 0xfd8   :  { %v805_v62 = vadd.f32 %v803_v61, %v795_v60 }
 0xfda   :  { %1438 = vtanh.f32 %v805_v62 }
 0xfe4   :  { %v1439_v63 = vpop.eup %1438 }
 0xfe5   :  { %808 = vrot.lane.b32.xlu1 %v1439_v63, %s1583_s11 }
0x1057   :  { %v809_v0 = vpop.permute.xlu1 %808 }
0x1058   :  { %v1795_v3 = vmul.f32 %v1437_v57, %v809_v0 }
0x105a   :  { %829 = vrot.lane.b32.xlu0 %v1795_v3, %s1584_s12 }
0x10cc   :  { %v830_v4 = vpop.permute.xlu0 %829 }
0x10cd   :  { %1298 = vmatmul.mubr.msk.f32.vlgmr.msra.gmra.mrb[6].mxu0 %vm99_vm1, %v830_v4 }
0x10ce   :  { %1372 = vmatpush3.bf16.msra.mxu0 %v1708_v32  ;;  %1319 = vmatprep.mubr.msk.f32.mxu0 %vm1581_vm0, %v1582_v2 }
0x10cf   :  { %1373 = vmatprep.subr.bf16.mxu0 %v1580_v1 }
0x10d2   :  { %1375 = vmatpush3.bf16.msra.mxu0 %v1711_v34 }
0x11a0   :  { %v899_v5 = vpop.f32.mrb[6].mxu0 }
0x11a1   :  { %v900_v6 = vadd.f32 %v1702_v13, %v899_v5  ;;  %v1299_v7 = vpop.f32.mrb[7].mxu0 }
0x11a3   :  { %1440 = vtanh.f32 %v900_v6  ;;  %v1174_v10 = vmul.f32 -1.442695, %v900_v6  ;;  %v1161_v6 = vld [vmem:[#allocation4] ss:$0 sm:$0xff] }
0x11a5   :  { %1442 = vpow2.f32 %v1174_v10 }
0x11ad   :  { %v1441_v8 = vpop.eup %1440 }
0x11ae   :  { %912 = vrot.lane.b32.xlu1 %v1441_v8, %s1583_s11 }
0x11af   :  { %v1443_v11 = vpop.eup %1442 }
0x11b0   :  { %v906_v12 = vadd.f32 1.0, %v1443_v11 }
0x11b2   :  { %1444 = vrcp.f32 %v906_v12 }
0x11bc   :  { %v1445_v32 = vpop.eup %1444 }
0x11bd   :  { %v910_v1 = vmul.f32 %v1445_v32, %v805_v62 }
0x1220   :  { %v913_v14 = vpop.permute.xlu1 %912 }
0x1221   :  { %v915_v2 = vmul.f32 %v1445_v32, %v913_v14 }
0x1223   :  { %917 = vrot.lane.b32.xlu0 %v915_v2, %s1584_s12 }
0x1295   :  { %v918_v34 = vpop.permute.xlu0 %917 }
0x1296   :  { %v920_v15 = vadd.f32 %v918_v34, %v910_v1 }
0x1298   :  { %1446 = vtanh.f32 %v920_v15 }
0x12a2   :  { %v1447_v16 = vpop.eup %1446 }
0x12a3   :  { %923 = vrot.lane.b32.xlu1 %v1447_v16, %s1583_s11 }
0x1315   :  { %v924_v17 = vpop.permute.xlu1 %923 }
0x1316   :  { %v926_v18 = vmul.f32 %v1445_v32, %v924_v17 }
0x1318   :  { %944 = vrot.lane.b32.xlu0 %v926_v18, %s1584_s12 }
0x138a   :  { %v945_v19 = vpop.permute.xlu0 %944 }
0x138b   :  { %1309 = vmatmul.mubr.msk.f32.vlgmr.msra.gmra.mrb[6].mxu1 %vm99_vm1, %v945_v19 }
0x145e   :  { %v1014_v20 = vpop.f32.mrb[6].mxu1 }
0x145f   :  { %v1015_v21 = vadd.f32 %v1702_v13, %v1014_v20  ;;  %v1310_v22 = vpop.f32.mrb[7].mxu1  ;;  %v200_v20 = vlaneseq }
0x1461   :  { %1448 = vtanh.f32 %v1015_v21  ;;  %v1176_v24 = vmul.f32 -1.442695, %v1015_v21  ;;  %v201_v21 = vand.u32 127, %v200_v20 }
0x1463   :  { %1450 = vpow2.f32 %v1176_v24  ;;  %vm246_vm2 = vcmp.eq.s32.totalorder %v201_v21, 0  ;;  %vm361_vm3 = vcmp.eq.s32.totalorder %v201_v21, 1  ;;  %vm476_vm4 = vcmp.eq.s32.totalorder %v201_v21, 2 }
0x1464   :  { %vm591_vm5 = vcmp.eq.s32.totalorder %v201_v21, 3  ;;  %vm706_vm6 = vcmp.eq.s32.totalorder %v201_v21, 4  ;;  %vm821_vm7 = vcmp.eq.s32.totalorder %v201_v21, 5  ;;  %vm936_vm8 = vcmp.eq.s32.totalorder %v201_v21, 6 }
0x1465   :  { %vm1051_vm9 = vcmp.eq.s32.totalorder %v201_v21, 7 }
0x146b   :  { %v1449_v23 = vpop.eup %1448 }
0x146c   :  { %1027 = vrot.lane.b32.xlu1 %v1449_v23, %s1583_s11 }
0x146d   :  { %v1451_v25 = vpop.eup %1450 }
0x146e   :  { %v1021_v26 = vadd.f32 1.0, %v1451_v25 }
0x1470   :  { %1452 = vrcp.f32 %v1021_v26 }
0x147a   :  { %v1453_v28 = vpop.eup %1452 }
0x147b   :  { %v1025_v13 = vmul.f32 %v1453_v28, %v920_v15 }
0x14de   :  { %v1028_v29 = vpop.permute.xlu1 %1027 }
0x14df   :  { %v1030_v30 = vmul.f32 %v1453_v28, %v1028_v29 }
0x14e1   :  { %1032 = vrot.lane.b32.xlu0 %v1030_v30, %s1584_s12 }
0x14e5   :  { %233 = vrot.lane.b32.xlu0 %v1160_v31, %s1585_s13 }
0x1553   :  { %v1033_v33 = vpop.permute.xlu0 %1032 }
0x1554   :  { %v1818_v35 = vadd.f32 %v1033_v33, %v1025_v13 }
0x1556   :  { %1454 = vtanh.f32 %v1818_v35 }
0x1557   :  { %v234_v38 = vpop.permute.xlu0 %233 }
0x1558   :  { %v236_v39 = vmul.f32 %v234_v38, %v1721_v37  ;;  %v352_v40 = vmul.f32 %v1736_v54, %v234_v38  ;;  %v582_v46 = vmul.f32 %v1766_v27, %v234_v38  ;;  %v467_v37 = vmul.f32 %v1751_v9, %v234_v38 }
0x1559   :  { %v812_v55 = vmul.f32 %v1795_v3, %v234_v38  ;;  %v697_v9 = vmul.f32 %v1781_v47, %v234_v38  ;;  %v927_v56 = vmul.f32 %v926_v18, %v234_v38 }
0x1560   :  { %v1455_v36 = vpop.eup %1454 }
0x1561   :  { %1038 = vrot.lane.b32.xlu1 %v1455_v36, %s1583_s11 }
0x1565   :  { %238 = vrot.lane.b32.xlu1 %v236_v39, %s1584_s12 }
0x1569   :  { %354 = vrot.lane.b32.xlu1 %v352_v40, %s1584_s12 }
0x15d3   :  { %v1039_v41 = vpop.permute.xlu1 %1038 }
0x15d4   :  { %v1041_v48 = vmul.f32 %v1453_v28, %v1039_v41 }
0x15d6   :  { %v1042_v57 = vmul.f32 %v1041_v48, %v234_v38 }
0x15d7   :  { %v239_v42 = vpop.permute.xlu1 %238 }
0x15d8   :  { %v242_v43 = vsel %vm99_vm1, %v239_v42, 0.0 }
0x15d9   :  { %243 = vadd.xlane.f32.xlu0 %v242_v43 }
0x15db   :  { %v355_v44 = vpop.permute.xlu1 %354 }
0x15dc   :  { %v357_v45 = vsel %vm99_vm1, %v355_v44, 0.0 }
0x15dd   :  { %358 = vadd.xlane.f32.xlu1 %v357_v45 }
0x15ee   :  { %584 = vrot.lane.b32.xlu1 %v582_v46, %s1584_s12 }
0x15ef   :  { %1059 = vrot.lane.b32.xlu0 %v1041_v48, %s1584_s12 }
0x15f3   :  { %469 = vrot.lane.b32.xlu0 %v467_v37, %s1584_s12 }
0x1666   :  { %v244_v54 = vpop.xlane.xlu0 %243 }
0x1667   :  { %v245_v7 = vadd.f32 %v1161_v6, %v244_v54 }
0x166a   :  { %v1060_v49 = vpop.permute.xlu0 %1059  ;;  %v359_v50 = vpop.xlane.xlu1 %358 }
0x166b   :  { %1320 = vmatmul.mubr.msk.f32.vlgmr.msra.gmra.mrb[8].mxu0 %vm99_vm1, %v1060_v49  ;;  %v360_v8 = vadd.f32 %v1161_v6, %v359_v50 }
0x166e   :  { %v470_v51 = vpop.permute.xlu0 %469  ;;  %v585_v52 = vpop.permute.xlu1 %584 }
0x166f   :  { %v472_v53 = vsel %vm99_vm1, %v470_v51, 0.0  ;;  %v587_v27 = vsel %vm99_vm1, %v585_v52, 0.0 }
0x1670   :  { %473 = vadd.xlane.f32.xlu0 %v472_v53  ;;  %588 = vadd.xlane.f32.xlu1 %v587_v27 }
0x1681   :  { %814 = vrot.lane.b32.xlu1 %v812_v55, %s1584_s12 }
0x1686   :  { %699 = vrot.lane.b32.xlu0 %v697_v9, %s1584_s12 }
0x168a   :  { %929 = vrot.lane.b32.xlu0 %v927_v56, %s1584_s12 }
0x168e   :  { %1044 = vrot.lane.b32.xlu0 %v1042_v57, %s1584_s12 }
0x16fd   :  { %v474_v59 = vpop.xlane.xlu0 %473  ;;  %v589_v60 = vpop.xlane.xlu1 %588 }
0x16fe   :  { %v475_v10 = vadd.f32 %v1161_v6, %v474_v59  ;;  %v590_v11 = vadd.f32 %v1161_v6, %v589_v60 }
0x1701   :  { %v700_v61 = vpop.permute.xlu0 %699  ;;  %v815_v62 = vpop.permute.xlu1 %814 }
0x1702   :  { %v702_v63 = vsel %vm99_vm1, %v700_v61, 0.0  ;;  %v817_v0 = vsel %vm99_vm1, %v815_v62, 0.0 }
0x1703   :  { %703 = vadd.xlane.f32.xlu1 %v702_v63  ;;  %818 = vadd.xlane.f32.xlu0 %v817_v0 }
0x1705   :  { %v930_v47 = vpop.permute.xlu0 %929 }
0x1706   :  { %v932_v3 = vsel %vm99_vm1, %v930_v47, 0.0 }
0x1707   :  { %933 = vadd.xlane.f32.xlu1 %v932_v3 }
0x1709   :  { %v1045_v4 = vpop.permute.xlu0 %1044 }
0x170a   :  { %v1047_v5 = vsel %vm99_vm1, %v1045_v4, 0.0 }
0x170b   :  { %1048 = vadd.xlane.f32.xlu0 %v1047_v5 }
0x1718   :  { %249 = vperm.xlu1 %1390, %v245_v7  }
0x171c   :  { %364 = vperm.xlu1 %1390, %v360_v8  }
0x1720   :  { %479 = vperm.xlu1 %1390, %v475_v10  }
0x1721   :  { %594 = vperm.xlu0 %1391, %v590_v11  }
0x173e   :  { %v1129_v12 = vpop.f32.mrb[8].mxu0 }
0x173f   :  { %v1321_v32 = vpop.f32.mrb[9].mxu0 }
0x1790   :  { %v819_v14 = vpop.xlane.xlu0 %818  ;;  %v704_v2 = vpop.xlane.xlu1 %703 }
0x1791   :  { %v820_v1 = vadd.f32 %v1161_v6, %v819_v14  ;;  %v705_v34 = vadd.f32 %v1161_v6, %v704_v2 }
0x1793   :  { %824 = vperm.xlu1 %1390, %v820_v1   ;;  %709 = vperm.xlu0 %1391, %v705_v34  }
0x1794   :  { %v934_v15 = vpop.xlane.xlu1 %933 }
0x1795   :  { %v935_v16 = vadd.f32 %v1161_v6, %v934_v15 }
0x1797   :  { %939 = vperm.xlu0 %1391, %v935_v16  }
0x1798   :  { %v1049_v17 = vpop.xlane.xlu0 %1048  ;;  %v250_v19 = vpop.permute.xlu1 %249 }
0x1799   :  { %v1050_v18 = vadd.f32 %v1161_v6, %v1049_v17  ;;  %v252_v25 = vsel %vm246_vm2, %v250_v19, 0.0 }
0x179b   :  { %1054 = vperm.xlu1 %1390, %v1050_v18  }
0x179c   :  { %v365_v22 = vpop.permute.xlu1 %364 }
0x179d   :  { %v367_v26 = vsel %vm361_vm3, %v365_v22, %v252_v25 }
0x179f   :  { %1135 = vrot.lane.b32.xlu1 %v1818_v35, %s1585_s13 }
0x17a0   :  { %v595_v23 = vpop.permute.xlu0 %594  ;;  %v480_v24 = vpop.permute.xlu1 %479 }
0x17a1   :  { %v482_v28 = vsel %vm476_vm4, %v480_v24, %v367_v26 }
0x17a2   :  { %v597_v30 = vsel %vm591_vm5, %v595_v23, %v482_v28 }
0x1812   :  { %v710_v29 = vpop.permute.xlu0 %709  ;;  %v825_v13 = vpop.permute.xlu1 %824 }
0x1813   :  { %v712_v31 = vsel %vm706_vm6, %v710_v29, %v597_v30 }
0x1814   :  { %v827_v35 = vsel %vm821_vm7, %v825_v13, %v712_v31 }
0x1816   :  { %v940_v33 = vpop.permute.xlu0 %939 }
0x1817   :  { %v942_v36 = vsel %vm936_vm8, %v940_v33, %v827_v35 }
0x181a   :  { %v1055_v38 = vpop.permute.xlu1 %1054 }
0x181b   :  { %v1057_v39 = vsel %vm1051_vm9, %v1055_v38, %v942_v36 }
0x181c   :  { %1139 = vst [vmem:[#allocation13] sm:$0xff] %v1057_v39 }
0x181d   :  { %1555 = shalt.err (!%p1552_p8)
}
0x181e   :  { %s1556_s0 = scalar_lea.hbm %s1869_s8, 128 }
0x181f   :  { %p1557_p9 = scmp.ne.s32.totalorder %s1869_s8, %s1556_s0  ;;  %p1560_p10 = scmp.lt.u32.totalorder %s1556_s0, %s1869_s8 }
0x1821   :  { %p1562_p11 = pnand %p1560_p10, %p1557_p9 }
0x1823   :  { %1565 = shalt.err (!%p1562_p11)
}
0x1824   :  { %1149 = dma.vmem_to_hbm [thread:$0]  %s1147_s14, 128, %s1869_s8, [#allocation7]   ;;  %v1136_v40 = vpop.permute.xlu1 %1135 }
0x1825   :  { %1138 = vst.msk [vmem:[#allocation3] sm:$0xff] %vm99_vm1, %v1136_v40 }
0x1826   :  { %1572 = dma.done.wait [#allocation7], 128  }
0x1827   :  { %1573 = vsyncadd [#allocation7], 4294967168 }
0x1828   :  { %1153 = vsyncpa [#allocation6], 1 }
0x1829   :  { %1154 = vsyncpa [#allocation9], 1 }
0x182a   :  { %1155 = vsyncpa [#allocation12], 1 }
0x182b   :  { %1156 = vsyncpa [#allocation7], 1 }

</bundles_post_ra>
